<compile_context>
chip_gen: v5e
topology: v5e:2x2
jax: 0.10.0
libtpu: 0.0.40
codegen_flags: <defaults>
</compile_context>

<pallas_src>
import math

import jax
import jax.numpy as jnp
from jax.experimental import pallas as pl
from jax.experimental.pallas import tpu as pltpu


_C1 = math.sqrt(2.0 / math.pi)
_C2 = 0.044715 * math.sqrt(2.0 / math.pi)


def _gelu_kernel(x_ref, o_ref):
    # Compute in f32 (matches PyTorch opmath for half dtypes); cast on store.
    x = x_ref[...].astype(jnp.float32)
    # 0.5*x*(1 + tanh(sqrt(2/pi)*(x + 0.044715*x^3)))
    # with the constant folded into the cubic: inner = x*(c1 + c2*x*x)
    inner = x * (jnp.float32(_C1) + jnp.float32(_C2) * (x * x))
    # NOTE(v7x): with bf16 I/O against 3.2 TB/s HBM the single EUP's f32 tanh
    # can become the binding slot; a bf16 tanh would halve EUP work at a small
    # accuracy cost.  Kept in f32 for parity with the PyTorch module.
    y = jnp.float32(0.5) * x * (jnp.float32(1.0) + jnp.tanh(inner))
    o_ref[...] = y.astype(o_ref.dtype)


def _sublane_multiple(dtype) -> int:
    # Second-to-last block dim must be a multiple of 8 (32-bit), 16 (16-bit),
    # 32 (8-bit) when the block is smaller than the full array extent.
    itemsize = jnp.dtype(dtype).itemsize
    return max(8, 32 // max(1, itemsize))


def _vmem_budget() -> int:
    try:
        cap = int(pltpu.get_tpu_info().vmem_capacity_bytes)
    except Exception:
        # Conservative fallback: assume the smallest generation (v7x: 64 MiB
        # per TensorCore) so the scoped request never exceeds physical VMEM.
        cap = 64 * 1024 * 1024
    # ~3/4 of physical, capped at 96 MiB (leaves headroom on 128 MiB parts).
    return min((cap * 3) // 4, 96 * 1024 * 1024)


def _choose_tiles(rows: int, cols: int, itemsize: int, sub: int, budget: int):
    """Pick (tile_rows, tile_cols) for a [rows, cols] slab within `budget` bytes."""
    # Effective live bytes per block element: in + out, double-buffered, in the
    # I/O dtype, plus ~2 f32 intermediates the kernel materializes.  This keeps
    # bf16/int8 inputs safe on 64 MiB-VMEM parts despite the f32 upcast.
    per_elem = 4 * itemsize + 8
    max_elems = max(sub * 128, budget // per_elem)

    # Keep the full last dim as the lane dim whenever it fits; only tile the
    # lane dim when it is a 128-multiple too big to hold even `sub` rows of.
    if cols % 128 == 0 and cols * sub > max_elems:
        tc = max(128, ((max_elems // sub) // 128) * 128)
        tc = min(tc, cols)
    else:
        tc = cols  # full-extent last dim is always a legal block dim

    tr = max(sub, ((max_elems // max(1, tc)) // sub) * sub)
    # Streaming throughput plateaus at a few MiB per block; cap the payload.
    cap_rows = max(sub, (((8 * 1024 * 1024) // max(1, tc * itemsize)) // sub) * sub)
    tr = min(tr, cap_rows)
    if tr >= rows:
        tr = rows  # full-extent block along rows is always legal
    return tr, tc


def gelu(x):
    """Tanh-approx GELU matching the PyTorch module's forward."""
    orig_shape = x.shape
    dtype = x.dtype
    if x.size == 0:
        return x

    # Collapse leading dims only — the minor (lane) dim is unchanged, so this
    # reshape is layout-free (no HBM relayout), unlike a flatten+repack.
    if x.ndim == 0:
        x2 = x.reshape(1, 1)
    elif x.ndim == 1:
        x2 = x.reshape(1, x.shape[0])
    else:
        x2 = x.reshape(-1, x.shape[-1])
    rows, cols = x2.shape

    itemsize = jnp.dtype(dtype).itemsize
    sub = _sublane_multiple(dtype)
    vmem_limit = _vmem_budget()
    # Leave half the scoped limit as slack for the pipeline / compiler temps.
    tr, tc = _choose_tiles(rows, cols, itemsize, sub, vmem_limit // 2)

    # Ensure multi-TC parts (v7x: 2 TensorCores) get >= 2 grid steps to shard.
    if pl.cdiv(rows, tr) * pl.cdiv(cols, tc) == 1 and rows >= 2 * sub:
        tr = max(sub, ((pl.cdiv(rows, 2) + sub - 1) // sub) * sub)

    grid = (pl.cdiv(rows, tr), pl.cdiv(cols, tc))

    out2 = pl.pallas_call(
        _gelu_kernel,
        out_shape=jax.ShapeDtypeStruct((rows, cols), dtype),
        grid=grid,
        in_specs=[pl.BlockSpec((tr, tc), lambda i, j: (i, j))],
        out_specs=pl.BlockSpec((tr, tc), lambda i, j: (i, j)),
        compiler_params=pltpu.CompilerParams(
            dimension_semantics=("parallel", "parallel"),
            vmem_limit_bytes=int(vmem_limit),
        ),
    )(x2)

    return out2.reshape(orig_shape)


def gelu_ref(x):
    xf = x.astype(jnp.float32)
    c = jnp.float32(math.sqrt(2.0 / math.pi))
    y = 0.5 * xf * (1.0 + jnp.tanh(c * (xf + 0.044715 * xf ** 3)))
    return y.astype(x.dtype)


if __name__ == "__main__":
    key = jax.random.PRNGKey(0)
    # GELU is typically applied to [batch, seq, hidden] activations.
    x = jax.random.normal(key, (2, 8, 32), dtype=jnp.float32)
    out = gelu(x)
    jax.block_until_ready(out)
    assert out.shape == x.shape and out.dtype == x.dtype
    assert jnp.allclose(out, gelu_ref(x), atol=1e-5, rtol=1e-5)

    # Larger lane-dense case (hidden a multiple of 128) exercising row tiling.
    x2 = jax.random.normal(jax.random.PRNGKey(1), (4, 128, 512), dtype=jnp.float32)
    out2 = gelu(x2)
    jax.block_until_ready(out2)
    assert jnp.allclose(out2, gelu_ref(x2), atol=1e-5, rtol=1e-5)

    # bf16 case exercising the in-kernel f32 upcast / downcast path.
    x3 = jax.random.normal(jax.random.PRNGKey(2), (16, 256), dtype=jnp.bfloat16)
    out3 = gelu(x3)
    jax.block_until_ready(out3)
    assert out3.dtype == jnp.bfloat16
    assert jnp.allclose(out3.astype(jnp.float32), gelu_ref(x3).astype(jnp.float32),
                        atol=2e-2, rtol=2e-2)

    print("KERNEL_OK")
</pallas_src>

<mosaic_0001>
module attributes {stable_mosaic.version = 11 : i64} {
  func.func @_gelu_kernel(%arg0: i32, %arg1: i32, %arg2: memref<8x32xf32, #tpu.memory_space<vmem>>, %arg3: memref<8x32xf32, #tpu.memory_space<vmem>>) attributes {dimension_semantics = [#tpu.dimension_semantics<parallel>, #tpu.dimension_semantics<parallel>], iteration_bounds = array<i64: 2, 1>, scalar_prefetch = 0 : i64, scratch_operands = 0 : i64, tpu.core_type = #tpu.core_type<tc>, window_params = [{transform_indices = @transform_0, window_bounds = array<i64: 8, 32>}, {transform_indices = @transform_1, window_bounds = array<i64: 8, 32>}]} {
    %c0 = arith.constant 0 : index
    %c0_0 = arith.constant 0 : index
    %0 = vector.load %arg2[%c0, %c0_0] : memref<8x32xf32, #tpu.memory_space<vmem>>, vector<8x32xf32>
    %1 = arith.mulf %0, %0 : vector<8x32xf32>
    %cst = arith.constant 0.0356774069 : f32
    %2 = vector.broadcast %cst : f32 to vector<8x32xf32>
    %3 = arith.mulf %2, %1 : vector<8x32xf32>
    %cst_1 = arith.constant 0.797884583 : f32
    %4 = vector.broadcast %cst_1 : f32 to vector<8x32xf32>
    %5 = arith.addf %4, %3 : vector<8x32xf32>
    %6 = arith.mulf %0, %5 : vector<8x32xf32>
    %cst_2 = arith.constant 5.000000e-01 : f32
    %7 = vector.broadcast %cst_2 : f32 to vector<8x32xf32>
    %8 = arith.mulf %7, %0 : vector<8x32xf32>
    %9 = math.tanh %6 : vector<8x32xf32>
    %cst_3 = arith.constant 1.000000e+00 : f32
    %10 = vector.broadcast %cst_3 : f32 to vector<8x32xf32>
    %11 = arith.addf %10, %9 : vector<8x32xf32>
    %12 = arith.mulf %8, %11 : vector<8x32xf32>
    %c0_4 = arith.constant 0 : index
    %c0_5 = arith.constant 0 : index
    %13 = vector.load %arg3[%c0_4, %c0_5] : memref<8x32xf32, #tpu.memory_space<vmem>>, vector<8x32xf32>
    tpu.vector_store %arg3[%c0_4, %c0_5], %12 {strides = array<i32>} : memref<8x32xf32, #tpu.memory_space<vmem>>, vector<8x32xf32>,
    return
  }
  func.func @transform_0(%arg0: i32, %arg1: i32) -> (i32, i32) {
    %c0_i32 = arith.constant 0 : i32
    return %arg0, %arg1 : i32, i32
  }
  func.func @transform_1(%arg0: i32, %arg1: i32) -> (i32, i32) {
    %c0_i32 = arith.constant 0 : i32
    return %arg0, %arg1 : i32, i32
  }
}

</mosaic_0001>

<bundles_post_ra>
// kernel: tpu_custom_call.1
= control target key start
LH: loop header
LB: loop body
LE: loop exit
PB: predicated region body
PF: predicated region fallthrough
CT: control target
= control target key end

     0   :  { %6 = vsyncpa [#allocation3], 0  ;;  %s580_s0 = inlined_call_operand.hbm [shape: f32[16,32], index: 0, kind: input, shape index: {}]   ;;  %s581_s1 = inlined_call_operand.hbm [shape: f32[16,32], index: 1, kind: output, shape index: {}]  }
   0x1   :  { %8 = vsyncpa [#allocation3 + $0x1], 0 }
   0x2   :  { %9 = vsyncpa [#allocation4], 0 }
   0x3   :  { %11 = vsyncpa [#allocation4 + $0x1], 0  ;;  %s460_s6 = smov 0   ;;  %s462_s7 = smov 0  }
   0x4   :  { %s464_s8 = smov 0   ;;  %s466_s9 = smov 0  }
   0x5   :  { %s468_s10 = smov 0   ;;  %s470_s11 = smov 0  }
   0x6 LB: > { %s259_s12 = sadd.s32 4294967295, %s448_s11   ;;  %s260_s13 = sadd.s32 4294967294, %s448_s11   ;;  %s448_s11 = sphi %s470_s11, %s17_s11   ;;  %s444_s10 = sphi %s468_s10, %s590_s10   ;;  %s440_s9 = sphi %s466_s9, %s589_s9   ;;  %s436_s8 = sphi %s464_s8, %s588_s8   ;;  %s432_s7 = sphi %s462_s7, %s587_s7   ;;  %s428_s6 = sphi %s460_s6, %s586_s6  }
   0x7   : > { %s29_s14 = sadd.s32 1, %s444_s10  ;;  %s38_s15 = sadd.s32 1, %s436_s8 }
   0x8   : > { %p31_p0 = scmp.ge.s32.totalorder %s29_s14, 2  ;;  %p45_p1 = scmp.ne.s32.totalorder %s436_s8, %s432_s7 }
   0x9   : > { %p46_p2 = scmp.eq.s32.totalorder %s448_s11, 0  ;;  %p51_p3 = scmp.ne.s32.totalorder %s432_s7, %s428_s6 }
   0xa   : > { %s592_s14 = smov (%p31_p0, %s29_s14), 0  ;;  %p52_p5 = scmp.eq.s32.totalorder %s259_s12, 0 }
   0xb   : > { %p501_p4 = por %p46_p2, %p45_p1  ;;  %s33_s17 = ssub.s32 %s444_s10, %s592_s14 }
   0xc   : > { %p77_p6 = scmp.eq.s32.totalorder %s259_s12, 1  ;;  %p36_p7 = scmp.eq.s32.totalorder %s33_s17, 0 }
   0xd   : > { %p507_p8 = por %p52_p5, %p51_p3  ;;  %p83_p10 = scmp.eq.s32.totalorder %s260_s13, 1 }
   0xe   : > { %p511_p9 = por %p77_p6, %p45_p1  ;;  %p262_p12 = scmp.ge.s32.totalorder %s448_s11, 2 }
   0xf   : > { %s516_s20 = scalar_select %p36_p7, %s436_s8, %s38_s15  }
  0x10   : > { %p518_p11 = por %p83_p10, %p51_p3  ;;  %p284_p13 = scmp.lt.s32.totalorder %s448_s11, 2 }
  0x11   : > { %s103_s22 = sand.u32 1, %s436_s8   ;;  %s264_s24 = sshll.u32 %s444_s10, 3 }
  0x12   : > { %s263_s23 = sshll.u32 %s103_s22, 3  ;;  %s112_s27 = scalar_lea.hbm %s580_s0, %s264_s24 }
  0x13   : > { %s107_s28 = scalar_lea.vmem [#allocation2], %s263_s23  ;;  %s114_s30 = sshll.u32 %s112_s27, 4  ;;  %s115_s30 = int_to_ptr.hbm [resolvable:$true] %s114_s30 }
  0x14   : > { %s116_s29 = sshll.u32 %s107_s28, 4  ;;  %p277_p0 = pnand %p284_p13, %p501_p4  ;;  %s117_s29 = int_to_ptr.vmem [resolvable:$true] %s116_s29 }
  0x15   : > { %p265_p1 = scmp.ge.s32.totalorder %s448_s11, 1  ;;  %p121_p2 = scmp.lt.s32.totalorder %s448_s11, 3 }
  0x16   : > { %s104_s2 = scalar_lea.sflag [#allocation3], %s103_s22 }
  0x17   : > { %279 = dma.hbm_to_vmem [thread:$0]  (!%p277_p0), %s115_s30, 128, %s117_s29, %s104_s2  }
  0x18   : > { %p122_p3 = pnand %p265_p1, %p121_p2 }
  0x19   : > { %s534_s3 = sand.u32 (!%p122_p3), 1, %s432_s7  }
  0x1a   : > { %125 = sbr.rel (%p122_p3) target bundleno = 55 (0x37), region = 24  ;;  %s266_s4 = sshll.u32 (!%p122_p3), %s534_s3, 3 }
  0x1b   : > { %s128_s5 = scalar_lea.sflag (!%p122_p3), [#allocation3], %s534_s3  ;;  %s131_s12 = scalar_lea.vmem (!%p122_p3), [#allocation2], %s266_s4 }
  0x1f   : > { %419 = dma.done.wait (%p507_p8), %s128_s5, 128  }
  0x20   : > { %421 = vsyncadd (%p507_p8), %s128_s5, 4294967168  ;;  %v151_v0 = vld [vmem:[%s131_s12] sm:$0xff]  ;;  %s269_s13 = sshll.u32 %s440_s9, 3  ;;  %s150_s22 = scalar_lea.vmem [#allocation5], %s266_s4  ;;  %vm160_vm0 = vcmask 261120  }
  0x21   : > { %v152_v1 = vmul.f32 %v151_v0, %v151_v0  ;;  %s174_s17 = scalar_lea.hbm %s581_s1, %s269_s13  ;;  %v156_v5 = vmul.f32 0.5, %v151_v0  ;;  %s176_s23 = sshll.u32 %s150_s22, 4  ;;  %s177_s23 = int_to_ptr.vmem [resolvable:$true] %s176_s23 }
  0x22   : > { %s178_s18 = sshll.u32 %s174_s17, 4  ;;  %s163_s24 = scalar_lea.sflag [#allocation4], %s534_s3  ;;  %s179_s18 = int_to_ptr.hbm [resolvable:$true] %s178_s18 }
  0x23   : > { %v153_v2 = vmul.f32 0.035677407, %v152_v1  ;;  %s380_s25 = sshra.s32 %s179_s18, 4  ;;  %s386_s28 = scalar_lea.hbm %s581_s1, 16  ;;  %s381_s25 = int_to_ptr.hbm [resolvable:$true] %s380_s25 }
  0x24   : > { %s382_s9 = scalar_lea.hbm %s381_s25, 8  ;;  %p387_p7 = scmp.lt.s32.totalorder %s381_s25, %s581_s1 }
  0x25   : > { %v154_v3 = vadd.f32 0.7978846, %v153_v2  ;;  %p383_p4 = scmp.ne.s32.totalorder %s381_s25, %s382_s9  ;;  %p388_p8 = scmp.lt.s32.totalorder %s386_s28, %s382_s9 }
  0x27   : > { %v155_v4 = vmul.f32 %v154_v3, %v151_v0  ;;  %p384_p5 = pnand %p383_p4, %p511_p9  ;;  %p389_p10 = por %p388_p8, %p387_p7 }
  0x29   : > { %334 = vtanh.f32 %v155_v4  ;;  %p385_p6 = pneg %p384_p5 }
  0x2b   : > { %p390_p13 = pnand %p389_p10, %p385_p6 }
  0x2f   : > { %v335_v6 = vpop.eup %334 }
  0x30   : > { %v158_v7 = vadd.f32 1.0, %v335_v6 }
  0x32   : > { %v159_v8 = vmul.f32 %v158_v7, %v156_v5 }
  0x34   : > { %161 = vst.msk [vmem:[%s150_s22] sm:$0xff] %vm160_vm0, %v159_v8 }
  0x35   : > { %393 = shalt.err (!%p390_p13)
}
  0x36   : > { %274 = dma.vmem_to_hbm [thread:$0]  (%p511_p9), %s177_s23, 128, %s179_s18, %s163_s24  }
  0x37 PF: > { %s190_s2 = sand.u32 1, %s428_s6   ;;  %p281_p0 = pnand %p262_p12, %p518_p11 }
  0x38   : > { %s191_s3 = scalar_lea.sflag [#allocation4], %s190_s2 }
  0x39   : > { %p282_p1 = pneg %p281_p0 }
  0x3b   : > { %423 = dma.done.wait (%p282_p1), %s191_s3, 128  }
  0x3c   : > { %425 = vsyncadd (%p282_p1), %s191_s3, 4294967168  ;;  %s17_s11 = sadd.s32 1, %s448_s11   ;;  %s586_s6 = smov %s432_s7 }
  0x3d   : > { %p14_p2 = scmp.ge.s32.totalorder %s17_s11, 4   ;;  %s587_s7 = smov %s436_s8 }
  0x3e   : > { %s588_s8 = smov %s516_s20  ;;  %s589_s9 = smov %s444_s10 }
  0x3f   : > { %s590_s10 = smov %s592_s14  ;;  %16 = sbr.rel (!%p14_p2) target bundleno = 6 (0x6), region = 69 }
  0x44   :  { %197 = vsyncpa [#allocation3], 1 }
  0x45   :  { %199 = vsyncpa [#allocation3 + $0x1], 1 }
  0x46   :  { %200 = vsyncpa [#allocation4], 1 }
  0x47   :  { %202 = vsyncpa [#allocation4 + $0x1], 1 }

</bundles_post_ra>
